<compile_context>
chip_gen: v7x
topology: tpu7x:2x2x1
jax: 0.10.0
libtpu: 0.0.40
codegen_flags: <defaults>
</compile_context>

<pallas_src>
import functools

import jax
import jax.numpy as jnp
from jax.experimental import pallas as pl
from jax.experimental.pallas import tpu as pltpu


def _cl_loss_kernel(q_ref, k_ref, labq_ref, labk_ref, expdiag_ref, o_ref, *,
                    inv_temp, batch):
    """One query-row tile of the contrastive loss.

    q_ref       (TB, D)  bf16   query rows of this tile (un-scaled features)
    k_ref       (B,  D)  bf16   all keys (VMEM-resident across the grid)
    labq_ref    (1,  TB) int32  labels of the query rows (lane-dense)
    labk_ref    (B,  1)  int32  labels of all keys (resident)
    expdiag_ref (1,  TB) f32    exp(sim_ii) for the query rows (wrapper-computed from
                                the same bf16-rounded operands the MXU sees)
    o_ref       (1,  TB) f32    per-row loss (lane-dense output)
    """
    # Fold 1/temperature into the small q tile (TB*D ops) instead of scaling the
    # (TB, B) similarity tile; keep bf16 MXU operands, f32 accumulation.
    q = (q_ref[...].astype(jnp.float32) * inv_temp).astype(jnp.bfloat16)
    k = k_ref[...]

    # sim^T (B, TB): keys along sublanes, queries along lanes, so every per-query
    # reduction (axis=0) lands lane-dense and the output store is unmasked.
    sim_t = jax.lax.dot_general(
        k, q,
        dimension_numbers=(((1,), (1,)), ((), ())),   # contract the feature dim
        preferred_element_type=jnp.float32)           # (B, TB) f32

    exp_sim = jnp.exp(sim_t)                          # EUP slot; computed once
    same = labk_ref[...] == labq_ref[...]             # (B,1)==(1,TB) -> (B,TB) bool

    # Masked-out entries contribute exp(0) = 1, exactly like the PyTorch reference.
    p_sum = jnp.sum(jnp.where(same, exp_sim, 1.0), axis=0, keepdims=True)    # (1,TB)
    s_sum = jnp.sum(exp_sim, axis=0, keepdims=True)                          # (1,TB)
    n_same = jnp.sum(same.astype(jnp.float32), axis=0, keepdims=True)        # incl. self

    # Algebraic mask elimination (no iota / off-diagonal select):
    #   sum_pos = sum_{same & off-diag} exp_sim + #(masked) = P - exp(sim_ii) + 1
    #   sum_neg = sum_{!same} exp_sim + #(same)             = S - P + B
    sum_pos = p_sum - expdiag_ref[...] + 1.0
    sum_neg = s_sum - p_sum + batch

    o_ref[...] = -jnp.log(sum_pos / sum_neg) / (n_same - 1.0)


def _choose_block_rows(batch, max_rows):
    """Largest TB that divides B, is a multiple of 128 (keeps the lane-dense (1, TB)
    blocks legal) and <= max_rows, preferring >= 2 tiles so the parallel grid axis can
    shard across both TensorCores on v7x. Falls back to one full-batch tile."""
    cands = [t for t in range(128, min(max_rows, batch) + 1, 128) if batch % t == 0]
    if not cands:
        return batch
    multi = [t for t in cands if batch // t >= 2]
    return max(multi) if multi else max(cands)


def cl_loss(features, labels, temperature=0.5, block_rows=256):
    """Contrastive loss: features (B, D) float, labels (B,) int. Returns scalar f32."""
    B, D = features.shape
    inv_temp = 1.0 / float(temperature)

    # Pre-cast once to bf16: the resident key block is never re-cast in-kernel and
    # HBM read traffic for both operands is halved.
    feats_bf16 = features.astype(jnp.bfloat16)

    # exp(sim_ii) per row, from exactly the bf16-rounded, temperature-scaled operands
    # the MXU sees (so the in-kernel diagonal subtraction is consistent).
    q_scaled = (feats_bf16.astype(jnp.float32) * inv_temp).astype(jnp.bfloat16)
    diag = jnp.sum(q_scaled.astype(jnp.float32) * feats_bf16.astype(jnp.float32), axis=1)
    exp_diag = jnp.exp(diag).reshape(1, B).astype(jnp.float32)

    lab_row = labels.reshape(1, B).astype(jnp.int32)   # query-side labels (lane-dense)
    lab_col = labels.reshape(B, 1).astype(jnp.int32)   # key-side labels (resident)

    TB = _choose_block_rows(B, block_rows)
    n_tiles = B // TB

    kernel = functools.partial(_cl_loss_kernel, inv_temp=inv_temp, batch=float(B))

    row_loss = pl.pallas_call(
        kernel,
        out_shape=jax.ShapeDtypeStruct((1, B), jnp.float32),
        grid=(n_tiles,),
        in_specs=[
            pl.BlockSpec((TB, D), lambda i: (i, 0)),   # query rows: streamed per tile
            pl.BlockSpec((B, D), lambda i: (0, 0)),    # all keys: VMEM-resident
            pl.BlockSpec((1, TB), lambda i: (0, i)),   # query labels (lane-dense)
            pl.BlockSpec((B, 1), lambda i: (0, 0)),    # key labels: resident
            pl.BlockSpec((1, TB), lambda i: (0, i)),   # exp(sim_ii) row
        ],
        out_specs=pl.BlockSpec((1, TB), lambda i: (0, i)),
        compiler_params=pltpu.CompilerParams(
            dimension_semantics=("parallel",),         # shards tiles across TCs on v7x
        ),
    )(feats_bf16, feats_bf16, lab_row, lab_col, exp_diag)

    # Only the final tiny mean over B scalars is left to XLA.
    return jnp.mean(row_loss)


def _reference(features, labels, temperature=0.5):
    """Straight JAX port of the PyTorch CLLoss.forward (including the exp(0)=1 quirk)."""
    B = features.shape[0]
    lab = labels.reshape(-1, 1)
    mask_label = (lab == lab.T).astype(jnp.float32)
    sim = jnp.matmul(features, features.T) / temperature
    not_eye = 1.0 - jnp.eye(B, dtype=jnp.float32)
    sim_pos = sim * mask_label * not_eye
    sim_neg = sim * (1.0 - mask_label)
    log_prob = jnp.log(jnp.exp(sim_pos).sum(1, keepdims=True)
                       / jnp.exp(sim_neg).sum(1, keepdims=True))
    mean_log_prob = log_prob / (mask_label.sum(1, keepdims=True) - 1.0)
    return -jnp.mean(mean_log_prob)


if __name__ == "__main__":
    key = jax.random.PRNGKey(0)
    B, D = 8, 128                                      # spec: features are [bsz, 128]

    feats = jax.random.normal(key, (B, D), jnp.float32)
    feats = feats / jnp.linalg.norm(feats, axis=1, keepdims=True)
    # Round through bf16 so the kernel's bf16 MXU operands are lossless vs the f32 reference.
    feats = feats.astype(jnp.bfloat16).astype(jnp.float32)
    # Every class has >= 2 members so (count - 1) never hits zero (matches valid torch usage).
    labels = jnp.array([0, 1, 0, 2, 1, 2, 0, 1], dtype=jnp.int32)

    loss = cl_loss(feats, labels, temperature=0.5)
    loss = jax.block_until_ready(loss)

    ref = _reference(feats, labels, temperature=0.5)
    assert loss.shape == (), loss.shape
    assert bool(jnp.isfinite(loss)), float(loss)
    assert jnp.allclose(loss, ref, atol=1e-4, rtol=1e-4), (float(loss), float(ref))

    print("KERNEL_OK")
</pallas_src>

<mosaic_0001>
module attributes {stable_mosaic.version = 11 : i64} {
  func.func @_cl_loss_kernel(%arg0: i32, %arg1: memref<8x128xbf16, #tpu.memory_space<vmem>>, %arg2: memref<8x128xbf16, #tpu.memory_space<vmem>>, %arg3: memref<1x8xi32, #tpu.memory_space<vmem>>, %arg4: memref<8x1xi32, #tpu.memory_space<vmem>>, %arg5: memref<1x8xf32, #tpu.memory_space<vmem>>, %arg6: memref<1x8xf32, #tpu.memory_space<vmem>>) attributes {dimension_semantics = [#tpu.dimension_semantics<parallel>], iteration_bounds = array<i64: 1>, scalar_prefetch = 0 : i64, scratch_operands = 0 : i64, tpu.core_type = #tpu.core_type<tc>, window_params = [{transform_indices = @transform_0, window_bounds = array<i64: 8, 128>}, {pipeline_mode = #tpu.pipeline_mode<synchronous>, transform_indices = @transform_1, window_bounds = array<i64: 8, 128>}, {transform_indices = @transform_2, window_bounds = array<i64: 1, 8>}, {pipeline_mode = #tpu.pipeline_mode<synchronous>, transform_indices = @transform_3, window_bounds = array<i64: 8, 1>}, {transform_indices = @transform_4, window_bounds = array<i64: 1, 8>}, {transform_indices = @transform_5, window_bounds = array<i64: 1, 8>}]} {
    %c0 = arith.constant 0 : index
    %c0_0 = arith.constant 0 : index
    %0 = vector.load %arg1[%c0, %c0_0] : memref<8x128xbf16, #tpu.memory_space<vmem>>, vector<8x128xbf16>
    %1 = arith.extf %0 : vector<8x128xbf16> to vector<8x128xf32>
    %cst = arith.constant 2.000000e+00 : f32
    %2 = vector.broadcast %cst : f32 to vector<8x128xf32>
    %3 = arith.mulf %1, %2 : vector<8x128xf32>
    %4 = arith.truncf %3 : vector<8x128xf32> to vector<8x128xbf16>
    %c0_1 = arith.constant 0 : index
    %c0_2 = arith.constant 0 : index
    %5 = vector.load %arg2[%c0_1, %c0_2] : memref<8x128xbf16, #tpu.memory_space<vmem>>, vector<8x128xbf16>
    %cst_3 = arith.constant dense<0.000000e+00> : vector<8x8xf32>
    %6 = tpu.matmul %5, %4, %cst_3 {dimension_numbers = #tpu.dot_dimension_numbers<[1], [1], [0], [0], [0, 0, 1, 0], [], []>} : vector<8x128xbf16>, vector<8x128xbf16>, vector<8x8xf32> -> vector<8x8xf32>
    %7 = math.exp %6 : vector<8x8xf32>
    %c0_4 = arith.constant 0 : index
    %c0_5 = arith.constant 0 : index
    %8 = vector.load %arg4[%c0_4, %c0_5] : memref<8x1xi32, #tpu.memory_space<vmem>>, vector<8x1xi32>
    %c0_6 = arith.constant 0 : index
    %c0_7 = arith.constant 0 : index
    %9 = vector.load %arg3[%c0_6, %c0_7] : memref<1x8xi32, #tpu.memory_space<vmem>>, vector<1x8xi32>
    %10 = vector.broadcast %8 : vector<8x1xi32> to vector<8x8xi32>
    %11 = vector.broadcast %9 : vector<1x8xi32> to vector<8x8xi32>
    %12 = arith.cmpi eq, %10, %11 : vector<8x8xi32>
    %cst_8 = arith.constant 1.000000e+00 : f32
    %13 = vector.broadcast %cst_8 : f32 to vector<8x8xf32>
    %14 = arith.select %12, %7, %13 : vector<8x8xi1>, vector<8x8xf32>
    %cst_9 = arith.constant dense<0.000000e+00> : vector<8xf32>
    %15 = vector.multi_reduction <add>, %14, %cst_9 [0] : vector<8x8xf32> to vector<8xf32>
    %16 = vector.shape_cast %15 : vector<8xf32> to vector<1x8xf32>
    %cst_10 = arith.constant dense<0.000000e+00> : vector<8xf32>
    %17 = vector.multi_reduction <add>, %7, %cst_10 [0] : vector<8x8xf32> to vector<8xf32>
    %18 = vector.shape_cast %17 : vector<8xf32> to vector<1x8xf32>
    %19 = arith.extui %12 : vector<8x8xi1> to vector<8x8xi32>
    %20 = arith.sitofp %19 : vector<8x8xi32> to vector<8x8xf32>
    %cst_11 = arith.constant dense<0.000000e+00> : vector<8xf32>
    %21 = vector.multi_reduction <add>, %20, %cst_11 [0] : vector<8x8xf32> to vector<8xf32>
    %22 = vector.shape_cast %21 : vector<8xf32> to vector<1x8xf32>
    %c0_12 = arith.constant 0 : index
    %c0_13 = arith.constant 0 : index
    %23 = vector.load %arg5[%c0_12, %c0_13] : memref<1x8xf32, #tpu.memory_space<vmem>>, vector<1x8xf32>
    %24 = arith.subf %16, %23 : vector<1x8xf32>
    %cst_14 = arith.constant 1.000000e+00 : f32
    %25 = vector.broadcast %cst_14 : f32 to vector<1x8xf32>
    %26 = arith.addf %24, %25 : vector<1x8xf32>
    %27 = arith.subf %18, %16 : vector<1x8xf32>
    %cst_15 = arith.constant 8.000000e+00 : f32
    %28 = vector.broadcast %cst_15 : f32 to vector<1x8xf32>
    %29 = arith.addf %27, %28 : vector<1x8xf32>
    %30 = arith.divf %26, %29 : vector<1x8xf32>
    %31 = math.log %30 : vector<1x8xf32>
    %cst_16 = arith.constant 0.000000e+00 : f32
    %32 = vector.broadcast %cst_16 : f32 to vector<1x8xf32>
    %33 = arith.subf %32, %31 : vector<1x8xf32>
    %cst_17 = arith.constant 1.000000e+00 : f32
    %34 = vector.broadcast %cst_17 : f32 to vector<1x8xf32>
    %35 = arith.subf %22, %34 : vector<1x8xf32>
    %36 = arith.divf %33, %35 : vector<1x8xf32>
    %c0_18 = arith.constant 0 : index
    %c0_19 = arith.constant 0 : index
    %37 = vector.load %arg6[%c0_18, %c0_19] : memref<1x8xf32, #tpu.memory_space<vmem>>, vector<1x8xf32>
    tpu.vector_store %arg6[%c0_18, %c0_19], %36 {strides = array<i32>} : memref<1x8xf32, #tpu.memory_space<vmem>>, vector<1x8xf32>,
    return
  }
  func.func @transform_0(%arg0: i32) -> (i32, i32) {
    %c0_i32 = arith.constant 0 : i32
    %c0_i32_0 = arith.constant 0 : i32
    return %arg0, %c0_i32 : i32, i32
  }
  func.func @transform_1(%arg0: i32) -> (i32, i32) {
    %c0_i32 = arith.constant 0 : i32
    %c0_i32_0 = arith.constant 0 : i32
    %c0_i32_1 = arith.constant 0 : i32
    return %c0_i32, %c0_i32_0 : i32, i32
  }
  func.func @transform_2(%arg0: i32) -> (i32, i32) {
    %c0_i32 = arith.constant 0 : i32
    %c0_i32_0 = arith.constant 0 : i32
    return %c0_i32, %arg0 : i32, i32
  }
  func.func @transform_3(%arg0: i32) -> (i32, i32) {
    %c0_i32 = arith.constant 0 : i32
    %c0_i32_0 = arith.constant 0 : i32
    %c0_i32_1 = arith.constant 0 : i32
    return %c0_i32, %c0_i32_0 : i32, i32
  }
  func.func @transform_4(%arg0: i32) -> (i32, i32) {
    %c0_i32 = arith.constant 0 : i32
    %c0_i32_0 = arith.constant 0 : i32
    return %c0_i32, %arg0 : i32, i32
  }
  func.func @transform_5(%arg0: i32) -> (i32, i32) {
    %c0_i32 = arith.constant 0 : i32
    %c0_i32_0 = arith.constant 0 : i32
    return %c0_i32, %arg0 : i32, i32
  }
}

</mosaic_0001>

<bundles_post_ra>
// kernel: tpu_custom_call.1
= control target key start
LH: loop header
LB: loop body
LE: loop exit
PB: predicated region body
PF: predicated region fallthrough
CT: control target
= control target key end

     0   :  { %v181_v1 = vmov 0.0   ;;  %vm182_vm0 = vmmov 0   ;;  %s242_s0 = inlined_call_operand.vmem [shape: bf16[8,128], index: 0, kind: input, shape index: {}]   ;;  %s243_s1 = inlined_call_operand.vmem [shape: bf16[8,128], index: 1, kind: input, shape index: {}]   ;;  %s244_s2 = inlined_call_operand.vmem [shape: s32[1,8], index: 2, kind: input, shape index: {}]   ;;  %s245_s3 = inlined_call_operand.vmem [shape: s32[8,1], index: 3, kind: input, shape index: {}]   ;;  %s246_s4 = inlined_call_operand.vmem [shape: f32[1,8], index: 4, kind: input, shape index: {}]   ;;  %s247_s5 = inlined_call_operand.hbm [shape: f32[1,8], index: 5, kind: output, shape index: {}]  }
   0x1   :  { %v22_v0 = vld [vmem:[%s242_s0] sm:$0xf]  ;;  %138 = vmatprep.subr.bf16.mxu0 %v181_v1  ;;  %140 = vmatprep.mubr.msk.bf16.mxu0 %vm182_vm0, %v181_v1 }
   0x2   :  { %v23_v2 = vunpack.c.l.bf16 %v22_v0  ;;  %v69_v3 = vld [vmem:[%s245_s3] sm:$0xff] }
   0x3   :  { %10 = vsyncpa [#allocation3], 0  ;;  %v183_v4 = vmov 0   ;;  %v26_v7 = vld [vmem:[%s243_s1] sm:$0xf]  ;;  %vm80_vm2 = vcmask 64512  }
   0x4   :  { %148 = vset.pattern.permute.xlu0 %v183_v4  ;;  %v24_v5 = vmul.f32 2.0, %v23_v2  ;;  %v133_v13 = vld [vmem:[%s244_s2] ss:$0 sm:$0xff]  ;;  %s184_s24 = smov [#allocation2]   ;;  %vm117_vm3 = vcmask 57344  }
   0x5   :  { %72 = vperm.xlu0 %148, %v69_v3   ;;  %v104_v39 = vld [vmem:[%s246_s4] sm:$0x1]  ;;  %s125_s25 = sshll.u32 %s184_s24, 4  ;;  %s126_s25 = int_to_ptr.vmem [resolvable:$true] %s125_s25 }
   0x6   :  { %v25_v6 = vpack.c.bf16 %v24_v5, %v24_v5  ;;  %s157_s4 = scalar_lea.vmem %s126_s25, 16  ;;  %s161_s26 = scalar_lea.vmem %s126_s25, 32 }
   0x7   :  { %p158_p0 = scmp.ne.s32.totalorder %s126_s25, %s157_s4  ;;  %p162_p1 = scmp.lt.s32.totalorder %s126_s25, %s126_s25 }
   0x8   :  { %139 = vmatpush3.bf16.xpose.msra.mxu0 %v25_v6  ;;  %p163_p2 = scmp.lt.s32.totalorder %s161_s26, %s157_s4 }
   0xa   :  { %p164_p3 = por %p163_p2, %p162_p1 }
   0xc   :  { %p165_p4 = pnand %p164_p3, %p158_p0 }
   0xf   :  { %141 = vmatmul.mubr.bf16.vlgmr.msra.gmra.mrb[0].mxu0 %v26_v7 }
  0x84   :  { %v73_v14 = vpop.permute.xlu0 %72 }
  0x85   :  { %vm78_vm1 = vcmp.eq.s32.totalorder %v73_v14, %v133_v13 }
  0x86   :  { %v134_v20 = vsel %vm78_vm1, 1.0, %v181_v1 }
  0x87   :  { %v97_v24 = vsel %vm80_vm2, %v134_v20, 0.0 }
  0x88   :  { %v98_v28 = vrot.slane %v97_v24, 4 }
  0x8a   :  { %v99_v33 = vadd.f32 %v98_v28, %v97_v24 }
  0x8c   :  { %v100_v36 = vrot.slane %v99_v33, 2 }
  0x8e   :  { %v101_v38 = vadd.f32 %v100_v36, %v99_v33 }
  0x90   :  { %v102_v40 = vrot.slane %v101_v38, 1 }
  0x92   :  { %v103_v42 = vadd.f32 %v102_v40, %v101_v38 }
  0x94   :  { %v135_v46 = vadd.f32 -1.0, %v103_v42 }
  0xe2   :  { %v61_v8 = vpop.f32.mrb[0].mxu0 }
  0xe3   :  { %v67_v9 = vmul.f32 1.442695, %v61_v8  ;;  %v142_v10 = vpop.f32.mrb[1].mxu0 }
  0xe4   :  { %v64_v11 = vpop.f32.mrb[2].mxu0 }
  0xe5   :  { %149 = vpow2.f32 %v67_v9  ;;  %v143_v12 = vpop.f32.mrb[3].mxu0 }
  0xef   :  { %v150_v15 = vpop.eup %149 }
  0xf0   :  { %v79_v16 = vsel %vm78_vm1, %v150_v15, 1.0  ;;  %v88_v17 = vsel %vm80_vm2, %v150_v15, 0.0 }
  0xf1   :  { %v81_v18 = vsel %vm80_vm2, %v79_v16, 0.0  ;;  %v89_v19 = vrot.slane %v88_v17, 4 }
  0xf2   :  { %v82_v21 = vrot.slane %v81_v18, 4 }
  0xf3   :  { %v90_v22 = vadd.f32 %v89_v19, %v88_v17 }
  0xf4   :  { %v83_v23 = vadd.f32 %v82_v21, %v81_v18 }
  0xf5   :  { %v91_v25 = vrot.slane %v90_v22, 2 }
  0xf6   :  { %v84_v26 = vrot.slane %v83_v23, 2 }
  0xf7   :  { %v92_v27 = vadd.f32 %v91_v25, %v90_v22 }
  0xf8   :  { %v85_v29 = vadd.f32 %v84_v26, %v83_v23 }
  0xf9   :  { %v93_v30 = vrot.slane %v92_v27, 1 }
  0xfa   :  { %v86_v31 = vrot.slane %v85_v29, 1 }
  0xfb   :  { %v94_v32 = vadd.f32 %v93_v30, %v92_v27 }
  0xfc   :  { %v87_v34 = vadd.f32 %v86_v31, %v85_v29 }
  0xfe   :  { %v107_v35 = vsub.f32 %v94_v32, %v87_v34  ;;  %v105_v41 = vsub.f32 %v87_v34, %v104_v39 }
 0x100   :  { %v108_v37 = vadd.f32 8.0, %v107_v35  ;;  %v106_v43 = vadd.f32 1.0, %v105_v41 }
 0x102   :  { %151 = vrcp.f32 %v108_v37 }
 0x10c   :  { %v152_v44 = vpop.eup %151 }
 0x10d   :  { %v110_v45 = vmul.f32 %v152_v44, %v106_v43 }
 0x10f   :  { %153 = vlog2.f32 %v110_v45 }
 0x110   :  { %155 = vrcp.f32 %v135_v46 }
 0x119   :  { %v154_v47 = vpop.eup %153 }
 0x11a   :  { %v112_v48 = vmul.f32 0.6931472, %v154_v47  ;;  %v156_v50 = vpop.eup %155 }
 0x11c   :  { %v113_v49 = vsub.f32 0.0, %v112_v48 }
 0x11e   :  { %v116_v51 = vmul.f32 %v156_v50, %v113_v49 }
 0x120   :  { %118 = vst.msk [vmem:[#allocation2] sm:$0x1] %vm117_vm3, %v116_v51 }
 0x121   :  { %168 = shalt.err (!%p165_p4)
}
 0x122   :  { %s169_s29 = scalar_lea.hbm %s247_s5, 16 }
 0x123   :  { %p170_p5 = scmp.ne.s32.totalorder %s247_s5, %s169_s29  ;;  %p173_p6 = scmp.lt.u32.totalorder %s169_s29, %s247_s5 }
 0x125   :  { %p175_p7 = pnand %p173_p6, %p170_p5 }
 0x127   :  { %178 = shalt.err (!%p175_p7)
}
 0x128   :  { %128 = dma.vmem_to_hbm [thread:$0]  %s126_s25, 16, %s247_s5, [#allocation3]  }
 0x129   :  { %179 = dma.done.wait [#allocation3], 16  }
 0x12a   :  { %180 = vsyncadd [#allocation3], 4294967280 }
 0x12b   :  { %132 = vsyncpa [#allocation3], 1 }

</bundles_post_ra>
